<compile_context>
chip_gen: v7x
topology: tpu7x:2x2x1
jax: 0.10.0
libtpu: 0.0.40
codegen_flags: <defaults>
</compile_context>

<pallas_src>
import functools

import jax
import jax.numpy as jnp
from jax.experimental import pallas as pl
from jax.experimental.pallas import tpu as pltpu


def _critic_kernel(x_ref, w1t_ref, b1_ref, w2t_ref, b2_ref, w3t_ref, b3_ref,
                   out_ref):
    # Feature-major: x (K, Bt), activations (H, Bt); batch sits on lanes.
    cdt = w1t_ref.dtype                                   # matmul operand dtype
    x = x_ref[...].astype(cdt)

    # Layer 1: (H, K) @ (K, Bt) -> (H, Bt), f32 MXU accumulation.
    h1 = jnp.dot(w1t_ref[...], x, preferred_element_type=jnp.float32)
    h1 = jnp.maximum(h1 + b1_ref[...], 0.0).astype(cdt)   # bias/ReLU in f32

    # Layer 2: (H, H) @ (H, Bt) -> (H, Bt)
    h2 = jnp.dot(w2t_ref[...], h1, preferred_element_type=jnp.float32)
    h2 = jnp.maximum(h2 + b2_ref[...], 0.0).astype(cdt)

    # Layer 3: (1, H) @ (H, Bt) -> (1, Bt) lane-dense q slab (plain matmul,
    # no transposed contraction needed in the feature-major layout).
    q = jnp.dot(w3t_ref[...], h2, preferred_element_type=jnp.float32)
    out_ref[...] = (q + b3_ref[...]).astype(out_ref.dtype)


def _pick_blocking(batch, block_b):
    """Per-generation batch block size and scoped-VMEM limit."""
    try:
        phys_vmem = int(pltpu.get_tpu_info().vmem_capacity_bytes)
    except Exception:
        phys_vmem = 64 * 1024 * 1024           # conservative: v7x per-TC VMEM
    # ~96 MiB on v5e/v6e (128 MiB physical), ~48 MiB on v7x (64 MiB per TC).
    vmem_limit = min((phys_vmem * 3) // 4, 96 * 1024 * 1024)
    if block_b is None:
        # Feature-major blocks cost ~0.5 KiB/row (double-buffered input slab +
        # h1/h2 temporaries + output), so even 16K rows use ~10 MiB.
        block_b = 16384 if phys_vmem >= 96 * 1024 * 1024 else 8192
    if batch <= block_b:
        bb = batch                             # single full-extent block
    else:
        bb = max((block_b // 128) * 128, 128)  # lane-aligned streaming block
    return bb, vmem_limit


def critic_forward(state, action, params, *, compute_dtype=jnp.float32,
                   block_b=None):
    """Fused critic MLP forward. state: (B, S), action: (B, A) -> (B, 1) f32."""
    w1, b1, w2, b2, w3, b3 = params
    B, S = state.shape
    A = action.shape[-1]
    H = w1.shape[1]
    K = S + A

    # Pack feature-major (batch on lanes): one fused transpose+concat(+cast).
    # Ideally this slab is produced upstream so the kernel streams it directly.
    x_t = jnp.concatenate([state.T, action.T], axis=0).astype(compute_dtype)  # (K, B)

    # Tiny resident weights, transposed for the feature-major matmuls.
    w1t = w1.T.astype(compute_dtype)                 # (H, K)
    w2t = w2.T.astype(compute_dtype)                 # (H, H)
    w3t = w3.reshape(1, H).astype(compute_dtype)     # (1, H)
    # Biases stay f32 (bias-add / ReLU computed in f32 inside the kernel).
    b1r = b1.reshape(H, 1).astype(jnp.float32)
    b2r = b2.reshape(H, 1).astype(jnp.float32)
    b3r = b3.reshape(1, 1).astype(jnp.float32)

    bb, vmem_limit = _pick_blocking(B, block_b)
    grid = (pl.cdiv(B, bb),)                         # no wrapper-side padding

    def resident(shape):
        # Constant index_map -> block stays resident in VMEM across grid steps.
        return pl.BlockSpec(shape, lambda i: (0,) * len(shape))

    q_lane = pl.pallas_call(
        _critic_kernel,
        out_shape=jax.ShapeDtypeStruct((1, B), jnp.float32),
        grid=grid,
        in_specs=[
            pl.BlockSpec((K, bb), lambda i: (0, i)),     # streaming input slab
            resident((H, K)), resident((H, 1)),
            resident((H, H)), resident((H, 1)),
            resident((1, H)), resident((1, 1)),
        ],
        out_specs=pl.BlockSpec((1, bb), lambda i: (0, i)),   # lane-dense q
        compiler_params=pltpu.CompilerParams(
            # "parallel": megacore sharding where available, no-op otherwise.
            # TODO(synk): on v7x confirm this splits the batch across both
            # TensorCores; if not, switch to pltpu.CORE_PARALLEL / pl.core_map.
            dimension_semantics=("parallel",),
            vmem_limit_bytes=vmem_limit,
        ),
    )(x_t, w1t, b1r, w2t, b2r, w3t, b3r)

    return q_lane.reshape(B, 1)


def init_params(key, state_dim, action_dim, hidden_dim):
    """Deterministic init mimicking nn.Linear's U(-1/sqrt(fan_in), 1/sqrt(fan_in))."""
    d_in = state_dim + action_dim
    ks = jax.random.split(key, 6)

    def uniform(k, shape, fan_in):
        bound = 1.0 / jnp.sqrt(jnp.float32(fan_in))
        return jax.random.uniform(k, shape, jnp.float32, -bound, bound)

    w1 = uniform(ks[0], (d_in, hidden_dim), d_in)
    b1 = uniform(ks[1], (hidden_dim,), d_in)
    w2 = uniform(ks[2], (hidden_dim, hidden_dim), hidden_dim)
    b2 = uniform(ks[3], (hidden_dim,), hidden_dim)
    w3 = uniform(ks[4], (hidden_dim, 1), hidden_dim)
    b3 = uniform(ks[5], (1,), hidden_dim)
    return (w1, b1, w2, b2, w3, b3)


def critic_reference(state, action, params):
    """Pure-JAX reference for correctness checking."""
    w1, b1, w2, b2, w3, b3 = params
    x = jnp.concatenate([state, action], axis=-1)
    h = jnp.maximum(x @ w1 + b1, 0.0)
    h = jnp.maximum(h @ w2 + b2, 0.0)
    return h @ w3 + b3


if __name__ == "__main__":
    B, STATE_DIM, ACTION_DIM, HIDDEN_DIM = 8, 16, 4, 32

    key = jax.random.PRNGKey(0)
    k_s, k_a, k_p, k_s2, k_a2 = jax.random.split(key, 5)

    state = jax.random.normal(k_s, (B, STATE_DIM), jnp.float32)
    action = jax.random.normal(k_a, (B, ACTION_DIM), jnp.float32)
    params = init_params(k_p, STATE_DIM, ACTION_DIM, HIDDEN_DIM)

    q_ref = critic_reference(state, action, params)

    # f32 path (single full-extent block).
    fwd_f32 = jax.jit(functools.partial(critic_forward, params=params))
    q = jax.block_until_ready(fwd_f32(state, action))
    assert q.shape == (B, 1)
    assert jnp.allclose(q, q_ref, atol=1e-4, rtol=1e-4), "f32 mismatch vs reference"

    # Uneven cdiv grid (no wrapper pad): B not a multiple of the block size.
    B2 = 300
    state2 = jax.random.normal(k_s2, (B2, STATE_DIM), jnp.float32)
    action2 = jax.random.normal(k_a2, (B2, ACTION_DIM), jnp.float32)
    fwd_blk = jax.jit(functools.partial(critic_forward, params=params, block_b=128))
    q2 = jax.block_until_ready(fwd_blk(state2, action2))
    q2_ref = critic_reference(state2, action2, params)
    assert q2.shape == (B2, 1)
    assert jnp.allclose(q2, q2_ref, atol=1e-4, rtol=1e-4), "uneven-grid mismatch"

    # bf16 streaming path (cast fuses into the packing op); f32 MXU accumulation,
    # loose tolerance due to bf16 operands.
    fwd_bf16 = jax.jit(functools.partial(critic_forward, params=params,
                                         compute_dtype=jnp.bfloat16))
    q_bf16 = jax.block_until_ready(fwd_bf16(state, action))
    assert q_bf16.shape == (B, 1)
    assert jnp.allclose(q_bf16, q_ref, atol=1e-1, rtol=1e-1), "bf16 mismatch vs reference"

    print("KERNEL_OK")
</pallas_src>

<mosaic_0001>
module attributes {stable_mosaic.version = 11 : i64} {
  func.func @_critic_kernel(%arg0: i32, %arg1: memref<20x8xf32, #tpu.memory_space<vmem>>, %arg2: memref<32x20xf32, #tpu.memory_space<vmem>>, %arg3: memref<32x1xf32, #tpu.memory_space<vmem>>, %arg4: memref<32x32xf32, #tpu.memory_space<vmem>>, %arg5: memref<32x1xf32, #tpu.memory_space<vmem>>, %arg6: memref<1x32xf32, #tpu.memory_space<vmem>>, %arg7: memref<1x1xf32, #tpu.memory_space<vmem>>, %arg8: memref<1x8xf32, #tpu.memory_space<vmem>>) attributes {dimension_semantics = [#tpu.dimension_semantics<parallel>], iteration_bounds = array<i64: 1>, scalar_prefetch = 0 : i64, scratch_operands = 0 : i64, tpu.core_type = #tpu.core_type<tc>, window_params = [{transform_indices = @transform_0, window_bounds = array<i64: 20, 8>}, {pipeline_mode = #tpu.pipeline_mode<synchronous>, transform_indices = @transform_1, window_bounds = array<i64: 32, 20>}, {pipeline_mode = #tpu.pipeline_mode<synchronous>, transform_indices = @transform_2, window_bounds = array<i64: 32, 1>}, {pipeline_mode = #tpu.pipeline_mode<synchronous>, transform_indices = @transform_3, window_bounds = array<i64: 32, 32>}, {pipeline_mode = #tpu.pipeline_mode<synchronous>, transform_indices = @transform_4, window_bounds = array<i64: 32, 1>}, {pipeline_mode = #tpu.pipeline_mode<synchronous>, transform_indices = @transform_5, window_bounds = array<i64: 1, 32>}, {pipeline_mode = #tpu.pipeline_mode<synchronous>, transform_indices = @transform_6, window_bounds = array<i64: 1, 1>}, {transform_indices = @transform_7, window_bounds = array<i64: 1, 8>}]} {
    %c0 = arith.constant 0 : index
    %c0_0 = arith.constant 0 : index
    %0 = vector.load %arg1[%c0, %c0_0] : memref<20x8xf32, #tpu.memory_space<vmem>>, vector<20x8xf32>
    %c0_1 = arith.constant 0 : index
    %c0_2 = arith.constant 0 : index
    %1 = vector.load %arg2[%c0_1, %c0_2] : memref<32x20xf32, #tpu.memory_space<vmem>>, vector<32x20xf32>
    %cst = arith.constant dense<0.000000e+00> : vector<32x8xf32>
    %2 = tpu.matmul %1, %0, %cst {dimension_numbers = #tpu.dot_dimension_numbers<[1], [0], [0], [1], [0, 0, 1, 1], [], []>} : vector<32x20xf32>, vector<20x8xf32>, vector<32x8xf32> -> vector<32x8xf32>
    %c0_3 = arith.constant 0 : index
    %c0_4 = arith.constant 0 : index
    %3 = vector.load %arg3[%c0_3, %c0_4] : memref<32x1xf32, #tpu.memory_space<vmem>>, vector<32x1xf32>
    %4 = vector.broadcast %3 : vector<32x1xf32> to vector<32x8xf32>
    %5 = arith.addf %2, %4 : vector<32x8xf32>
    %cst_5 = arith.constant 0.000000e+00 : f32
    %6 = vector.broadcast %cst_5 : f32 to vector<32x8xf32>
    %7 = arith.maximumf %5, %6 : vector<32x8xf32>
    %c0_6 = arith.constant 0 : index
    %c0_7 = arith.constant 0 : index
    %8 = vector.load %arg4[%c0_6, %c0_7] : memref<32x32xf32, #tpu.memory_space<vmem>>, vector<32x32xf32>
    %cst_8 = arith.constant dense<0.000000e+00> : vector<32x8xf32>
    %9 = tpu.matmul %8, %7, %cst_8 {dimension_numbers = #tpu.dot_dimension_numbers<[1], [0], [0], [1], [0, 0, 1, 1], [], []>} : vector<32x32xf32>, vector<32x8xf32>, vector<32x8xf32> -> vector<32x8xf32>
    %c0_9 = arith.constant 0 : index
    %c0_10 = arith.constant 0 : index
    %10 = vector.load %arg5[%c0_9, %c0_10] : memref<32x1xf32, #tpu.memory_space<vmem>>, vector<32x1xf32>
    %11 = vector.broadcast %10 : vector<32x1xf32> to vector<32x8xf32>
    %12 = arith.addf %9, %11 : vector<32x8xf32>
    %cst_11 = arith.constant 0.000000e+00 : f32
    %13 = vector.broadcast %cst_11 : f32 to vector<32x8xf32>
    %14 = arith.maximumf %12, %13 : vector<32x8xf32>
    %c0_12 = arith.constant 0 : index
    %c0_13 = arith.constant 0 : index
    %15 = vector.load %arg6[%c0_12, %c0_13] : memref<1x32xf32, #tpu.memory_space<vmem>>, vector<1x32xf32>
    %cst_14 = arith.constant dense<0.000000e+00> : vector<1x8xf32>
    %16 = tpu.matmul %15, %14, %cst_14 {dimension_numbers = #tpu.dot_dimension_numbers<[1], [0], [0], [1], [0, 0, 1, 1], [], []>} : vector<1x32xf32>, vector<32x8xf32>, vector<1x8xf32> -> vector<1x8xf32>
    %c0_15 = arith.constant 0 : index
    %c0_16 = arith.constant 0 : index
    %17 = vector.load %arg7[%c0_15, %c0_16] : memref<1x1xf32, #tpu.memory_space<vmem>>, vector<1x1xf32>
    %18 = vector.broadcast %17 : vector<1x1xf32> to vector<1x8xf32>
    %19 = arith.addf %16, %18 : vector<1x8xf32>
    %c0_17 = arith.constant 0 : index
    %c0_18 = arith.constant 0 : index
    %20 = vector.load %arg8[%c0_17, %c0_18] : memref<1x8xf32, #tpu.memory_space<vmem>>, vector<1x8xf32>
    tpu.vector_store %arg8[%c0_17, %c0_18], %19 {strides = array<i32>} : memref<1x8xf32, #tpu.memory_space<vmem>>, vector<1x8xf32>,
    return
  }
  func.func @transform_0(%arg0: i32) -> (i32, i32) {
    %c0_i32 = arith.constant 0 : i32
    %c0_i32_0 = arith.constant 0 : i32
    return %c0_i32, %arg0 : i32, i32
  }
  func.func @transform_1(%arg0: i32) -> (i32, i32) {
    %c0_i32 = arith.constant 0 : i32
    %c0_i32_0 = arith.constant 0 : i32
    %c0_i32_1 = arith.constant 0 : i32
    return %c0_i32, %c0_i32_0 : i32, i32
  }
  func.func @transform_2(%arg0: i32) -> (i32, i32) {
    %c0_i32 = arith.constant 0 : i32
    %c0_i32_0 = arith.constant 0 : i32
    %c0_i32_1 = arith.constant 0 : i32
    return %c0_i32, %c0_i32_0 : i32, i32
  }
  func.func @transform_3(%arg0: i32) -> (i32, i32) {
    %c0_i32 = arith.constant 0 : i32
    %c0_i32_0 = arith.constant 0 : i32
    %c0_i32_1 = arith.constant 0 : i32
    return %c0_i32, %c0_i32_0 : i32, i32
  }
  func.func @transform_4(%arg0: i32) -> (i32, i32) {
    %c0_i32 = arith.constant 0 : i32
    %c0_i32_0 = arith.constant 0 : i32
    %c0_i32_1 = arith.constant 0 : i32
    return %c0_i32, %c0_i32_0 : i32, i32
  }
  func.func @transform_5(%arg0: i32) -> (i32, i32) {
    %c0_i32 = arith.constant 0 : i32
    %c0_i32_0 = arith.constant 0 : i32
    %c0_i32_1 = arith.constant 0 : i32
    return %c0_i32, %c0_i32_0 : i32, i32
  }
  func.func @transform_6(%arg0: i32) -> (i32, i32) {
    %c0_i32 = arith.constant 0 : i32
    %c0_i32_0 = arith.constant 0 : i32
    %c0_i32_1 = arith.constant 0 : i32
    return %c0_i32, %c0_i32_0 : i32, i32
  }
  func.func @transform_7(%arg0: i32) -> (i32, i32) {
    %c0_i32 = arith.constant 0 : i32
    %c0_i32_0 = arith.constant 0 : i32
    return %c0_i32, %arg0 : i32, i32
  }
}

</mosaic_0001>

<bundles_post_ra>
// kernel: critic_forward.1
= control target key start
LH: loop header
LB: loop body
LE: loop exit
PB: predicated region body
PF: predicated region fallthrough
CT: control target
= control target key end

     0   :  { %s727_s0 = inlined_call_operand.vmem [shape: f32[20,8], index: 0, kind: input, shape index: {}]   ;;  %s728_s1 = inlined_call_operand.vmem [shape: f32[32,20], index: 1, kind: input, shape index: {}]   ;;  %s729_s2 = inlined_call_operand.hbm [shape: f32[32,1], index: 2, kind: input, shape index: {}]   ;;  %s730_s3 = inlined_call_operand.vmem [shape: f32[32,32], index: 3, kind: input, shape index: {}]   ;;  %s731_s4 = inlined_call_operand.hbm [shape: f32[32,1], index: 4, kind: input, shape index: {}]   ;;  %s732_s5 = inlined_call_operand.vmem [shape: f32[1,32], index: 5, kind: input, shape index: {}]   ;;  %s733_s6 = inlined_call_operand.<no memory space> [shape: f32[1,1], index: 6, kind: input, shape index: {}]   ;;  %s734_s7 = inlined_call_operand.hbm [shape: f32[1,8], index: 7, kind: output, shape index: {}]  }
   0x1   :  { %v12_v0 = vstv %s733_s6 }
   0x2   :  { %13 = vst [vmem:[#allocation2] sm:$0x1] %v12_v0 }
   0x3   :  { %14 = vsyncpa [#allocation4], 0 }
   0x4   :  { %15 = vsyncpa [#allocation7], 0 }
   0x5   :  { %16 = vsyncpa [#allocation5], 0  ;;  %s594_s26 = smov [#allocation3]   ;;  %s522_s30 = scalar_lea.hbm %s729_s2, 512 }
   0x6   :  { %s26_s27 = sshll.u32 %s594_s26, 4  ;;  %p523_p0 = scmp.ne.s32.totalorder %s729_s2, %s522_s30  ;;  %s27_s27 = int_to_ptr.vmem [resolvable:$true] %s26_s27 }
   0x7   :  { %p526_p1 = scmp.lt.u32.totalorder %s522_s30, %s729_s2 }
   0x9   :  { %p528_p2 = pnand %p526_p1, %p523_p0 }
   0xb   :  { %531 = shalt.err (!%p528_p2)
}
   0xc   :  { %s532_s6 = scalar_lea.vmem %s27_s27, 512  ;;  %p537_p4 = scmp.lt.s32.totalorder %s27_s27, %s27_s27 }
   0xd   :  { %p533_p3 = scmp.ne.s32.totalorder %s27_s27, %s532_s6  ;;  %p538_p5 = scmp.lt.s32.totalorder %s532_s6, %s532_s6 }
   0xf   :  { %p539_p6 = por %p538_p5, %p537_p4 }
  0x11   :  { %p540_p7 = pnand %p539_p6, %p533_p3 }
  0x13   :  { %543 = shalt.err (!%p540_p7)
}
  0x14   :  { %s595_s12 = smov 128   ;;  %s596_s13 = smov 8  }
  0x15   :  { %32 = dma.hbm_to_vmem [thread:$0]  %s729_s2, 512, %s27_s27, [#allocation4], %s595_s12, %s595_s12, %s596_s13  }
  0x16   :  { %s597_s16 = smov [#allocation6]   ;;  %s544_s20 = scalar_lea.hbm %s731_s4, 512 }
  0x17   :  { %s40_s17 = sshll.u32 %s597_s16, 4  ;;  %p545_p8 = scmp.ne.s32.totalorder %s731_s4, %s544_s20  ;;  %s41_s17 = int_to_ptr.vmem [resolvable:$true] %s40_s17 }
  0x18   :  { %p548_p9 = scmp.lt.u32.totalorder %s544_s20, %s731_s4 }
  0x1a   :  { %p550_p10 = pnand %p548_p9, %p545_p8 }
  0x1c   :  { %553 = shalt.err (!%p550_p10)
}
  0x1d   :  { %s554_s25 = scalar_lea.vmem %s41_s17, 512  ;;  %p559_p12 = scmp.lt.s32.totalorder %s41_s17, %s41_s17 }
  0x1e   :  { %p555_p11 = scmp.ne.s32.totalorder %s41_s17, %s554_s25  ;;  %p560_p13 = scmp.lt.s32.totalorder %s554_s25, %s554_s25 }
  0x20   :  { %p561_p0 = por %p560_p13, %p559_p12 }
  0x22   :  { %p562_p1 = pnand %p561_p0, %p555_p11 }
  0x24   :  { %565 = shalt.err (!%p562_p1)
}
  0x25   :  { %46 = dma.hbm_to_vmem [thread:$0]  %s731_s4, 512, %s41_s17, [#allocation7], %s595_s12, %s595_s12, %s596_s13  }
  0x26   :  { %588 = dma.done.wait [#allocation4], 512  }
  0x27   :  { %589 = vsyncadd [#allocation4], 4294966784 }
  0x28   :  { %590 = dma.done.wait [#allocation7], 512  }
  0x29   :  { %591 = vsyncadd [#allocation7], 4294966784  ;;  %v598_v1 = vmov 0   ;;  %vm88_vm0 = vcmask 162816   ;;  %v57_v2 = vld [vmem:[%s727_s0] sm:$0xff]  ;;  %v58_v3 = vld [vmem:[%s727_s0 + $0x8] sm:$0xff]  ;;  %v331_v62 = vlaneseq }
  0x2a   :  { %520 = vset.pattern.permute.xlu0 %v598_v1  ;;  %521 = vset.pattern.permute.xlu1 %v598_v1  ;;  %v493_v4 = vpack.c.bf16 %v58_v3, %v57_v2  ;;  %v60_v5 = vld [vmem:[%s728_s1] sm:$0xff]  ;;  %v59_v6 = vld [vmem:[%s727_s0 + $0x10] sm:$0xf]  ;;  %vm101_vm1 = vcmask 1043456   ;;  %v61_v11 = vld [vmem:[%s728_s1 + $0x8] sm:$0xff]  ;;  %vm222_vm2 = vcmask 261120  }
  0x2b   :  { %462 = vmatprep.mubr.msk.f32.mxu0 %vm88_vm0, %v60_v5  ;;  %v64_v7 = vld [vmem:[#allocation3] sm:$0xff]  ;;  %v66_v8 = vld [vmem:[#allocation3 + $0x10] sm:$0xff]  ;;  %v65_v9 = vld [vmem:[#allocation3 + $0x8] sm:$0xff]  ;;  %v599_v41 = vmov 0.0|0.0   ;;  %vm600_vm3 = vmmov 0   ;;  %v601_v42 = vmov 0.0  }
  0x2c   :  { %494 = vmatprep.subr.bf16.mxu0 %v493_v4  ;;  %70 = vperm.xlu0 %520, %v64_v7   ;;  %v67_v10 = vld [vmem:[#allocation3 + $0x18] sm:$0xff]  ;;  %v62_v12 = vld [vmem:[%s728_s1 + $0x10] sm:$0xff]  ;;  %v198_v13 = vld [vmem:[#allocation6] sm:$0xff]  ;;  %v332_v63 = vshrl.u32 %v331_v62, 7  ;;  %s602_s23 = smov [#allocation8]   ;;  %vm408_vm4 = vcmask 57344  }
  0x2d   :  { %496 = vmatpush3.bf16.msra.mxu0 %v493_v4  ;;  %80 = vperm.xlu1 %521, %v66_v8   ;;  %v199_v14 = vld [vmem:[#allocation6 + $0x8] sm:$0xff]  ;;  %v63_v15 = vld [vmem:[%s728_s1 + $0x18] sm:$0xff]  ;;  %v325_v18 = vld [vmem:[#allocation2] sm:$0x1]  ;;  %s416_s24 = sshll.u32 %s602_s23, 4  ;;  %s417_s24 = int_to_ptr.vmem [resolvable:$true] %s416_s24 }
  0x2e   :  { %460 = vmatprep.subr.msk.mxu0 %vm101_vm1, %v59_v6  ;;  %v200_v16 = vld [vmem:[#allocation6 + $0x10] sm:$0xff]  ;;  %v201_v17 = vld [vmem:[#allocation6 + $0x18] sm:$0xff]  ;;  %v195_v38 = vld [vmem:[%s730_s3 + $0x8] sm:$0xff]  ;;  %v333_v0 = vsub.s32 0, %v332_v63  ;;  %s566_s25 = scalar_lea.vmem %s417_s24, 16  ;;  %s570_s2 = scalar_lea.vmem %s417_s24, 32 }
  0x2f   :  { %v194_v19 = vld [vmem:[%s730_s3] sm:$0xff]  ;;  %v196_v39 = vld [vmem:[%s730_s3 + $0x10] sm:$0xff]  ;;  %v197_v40 = vld [vmem:[%s730_s3 + $0x18] sm:$0xff]  ;;  %p567_p2 = scmp.ne.s32.totalorder %s417_s24, %s566_s25  ;;  %p571_p3 = scmp.lt.s32.totalorder %s417_s24, %s417_s24 }
  0x30   :  { %75 = vperm.xlu0 %520, %v65_v9   ;;  %476 = vmatprep.mubr.msk.f32.mxu1 %vm222_vm2, %v194_v19  ;;  %v324_v61 = vld [vmem:[%s732_s5] sm:$0x1]  ;;  %p572_p4 = scmp.lt.s32.totalorder %s570_s2, %s566_s25 }
  0x31   :  { %461 = vmatpush3.msk.msra.mxu0 %vm101_vm1, %v59_v6  ;;  %85 = vperm.xlu1 %521, %v67_v10  }
  0x32   :  { %463 = vmatmul.mubr.msk.f32.vlgmr.msra.gmra.mrb[0].mxu0 %vm88_vm0, %v61_v11  ;;  %505 = vmatprep.subr.bf16.mxu0 %v599_v41  ;;  %p573_p5 = por %p572_p4, %p571_p3 }
  0x33   :  { %465 = vmatprep.mubr.msk.f32.mxu0 %vm88_vm0, %v62_v12 }
  0x34   :  { %204 = vperm.xlu0 %520, %v198_v13   ;;  %p574_p6 = pnand %p573_p5, %p567_p2 }
  0x35   :  { %209 = vperm.xlu1 %521, %v199_v14  }
  0x36   :  { %466 = vmatmul.mubr.msk.f32.gmra.mrb[2].mxu0 %vm88_vm0, %v63_v15 }
  0x37   :  { %490 = vmatprep.mubr.msk.f32.mxu0 %vm600_vm3, %v601_v42 }
  0x38   :  { %214 = vperm.xlu0 %520, %v200_v16  }
  0x39   :  { %219 = vperm.xlu1 %521, %v201_v17  }
  0x3c   :  { %328 = vperm.xlu0 %520, %v325_v18  }
  0xab   :  { %v71_v20 = vpop.permute.xlu0 %70 }
  0xac   :  { %v81_v21 = vpop.permute.xlu1 %80 }
  0xaf   :  { %v76_v22 = vpop.permute.xlu0 %75 }
  0xb0   :  { %v86_v28 = vpop.permute.xlu1 %85 }
  0xb3   :  { %v205_v44 = vpop.permute.xlu0 %204 }
  0xb4   :  { %v210_v43 = vpop.permute.xlu1 %209 }
  0xb7   :  { %v215_v53 = vpop.permute.xlu0 %214 }
  0xb8   :  { %v220_v50 = vpop.permute.xlu1 %219 }
  0xbb   :  { %v329_v1 = vpop.permute.xlu0 %328 }
  0xbc   :  { %v334_v2 = vrot.slane %v329_v1, %v333_v0 }
 0x105   :  { %v464_v23 = vpop.f32.mrb[0].mxu0 }
 0x106   :  { %v177_v24 = vadd.f32 %v464_v23, %v76_v22  ;;  %v171_v25 = vpop.f32.mrb[1].mxu0 }
 0x107   :  { %v172_v26 = vadd.f32 %v171_v25, %v71_v20 }
 0x108   :  { %v191_v27 = vmax.f32 %v177_v24, 0.0 }
 0x109   :  { %v190_v29 = vmax.f32 %v172_v26, 0.0  ;;  %v467_v30 = vpop.f32.mrb[2].mxu0 }
 0x10a   :  { %v187_v31 = vadd.f32 %v467_v30, %v86_v28  ;;  %v181_v32 = vpop.f32.mrb[3].mxu0 }
 0x10b   :  { %v182_v33 = vadd.f32 %v181_v32, %v81_v21  ;;  %v497_v34 = vpack.c.bf16 %v191_v27, %v190_v29 }
 0x10c   :  { %v193_v35 = vmax.f32 %v187_v31, 0.0 }
 0x10d   :  { %v192_v36 = vmax.f32 %v182_v33, 0.0  ;;  %498 = vmatprep.subr.bf16.mxu1 %v497_v34 }
 0x10e   :  { %500 = vmatpush3.bf16.msra.mxu1 %v497_v34 }
 0x10f   :  { %v501_v37 = vpack.c.bf16 %v193_v35, %v192_v36 }
 0x111   :  { %502 = vmatprep.subr.bf16.mxu1 %v501_v37 }
 0x112   :  { %504 = vmatpush3.bf16.msra.mxu1 %v501_v37 }
 0x115   :  { %477 = vmatmul.mubr.msk.f32.vlgmr.msra.gmra.mrb[0].mxu1 %vm222_vm2, %v195_v38 }
 0x116   :  { %479 = vmatprep.mubr.msk.f32.mxu1 %vm222_vm2, %v196_v39 }
 0x119   :  { %480 = vmatmul.mubr.msk.f32.gmra.mrb[2].mxu1 %vm222_vm2, %v197_v40 }
 0x1e8   :  { %v478_v45 = vpop.f32.mrb[0].mxu1 }
 0x1e9   :  { %v307_v46 = vadd.f32 %v478_v45, %v210_v43  ;;  %v301_v47 = vpop.f32.mrb[1].mxu1 }
 0x1ea   :  { %v302_v48 = vadd.f32 %v301_v47, %v205_v44 }
 0x1eb   :  { %v321_v49 = vmax.f32 %v307_v46, 0.0 }
 0x1ec   :  { %v320_v51 = vmax.f32 %v302_v48, 0.0  ;;  %v481_v52 = vpop.f32.mrb[2].mxu1 }
 0x1ed   :  { %v317_v54 = vadd.f32 %v481_v52, %v220_v50  ;;  %v311_v55 = vpop.f32.mrb[3].mxu1 }
 0x1ee   :  { %v506_v56 = vpack.c.bf16 %v321_v49, %v320_v51  ;;  %v312_v57 = vadd.f32 %v311_v55, %v215_v53 }
 0x1ef   :  { %v323_v58 = vmax.f32 %v317_v54, 0.0 }
 0x1f0   :  { %v322_v59 = vmax.f32 %v312_v57, 0.0  ;;  %507 = vmatpush3.bf16.msra.mxu0 %v506_v56 }
 0x1f1   :  { %508 = vmatprep.subr.bf16.mxu0 %v599_v41 }
 0x1f2   :  { %v509_v60 = vpack.c.bf16 %v323_v58, %v322_v59 }
 0x1f4   :  { %510 = vmatpush3.bf16.msra.mxu0 %v509_v60 }
 0x1f7   :  { %491 = vmatmul.mubr.msk.f32.vlgmr.msra.gmra.mrb[4].mxu0 %vm222_vm2, %v324_v61 }
 0x2ca   :  { %v404_v3 = vpop.f32.mrb[4].mxu0 }
 0x2cb   :  { %v405_v4 = vadd.f32 %v404_v3, %v334_v2  ;;  %v492_v5 = vpop.f32.mrb[5].mxu0 }
 0x2cd   :  { %409 = vst.msk [vmem:[#allocation8] sm:$0x1] %vm408_vm4, %v405_v4 }
 0x2ce   :  { %577 = shalt.err (!%p574_p6)
}
 0x2cf   :  { %s578_s27 = scalar_lea.hbm %s734_s7, 16 }
 0x2d0   :  { %p579_p7 = scmp.ne.s32.totalorder %s734_s7, %s578_s27  ;;  %p582_p8 = scmp.lt.u32.totalorder %s578_s27, %s734_s7 }
 0x2d2   :  { %p584_p9 = pnand %p582_p8, %p579_p7 }
 0x2d4   :  { %587 = shalt.err (!%p584_p9)
}
 0x2d5   :  { %419 = dma.vmem_to_hbm [thread:$0]  %s417_s24, 16, %s734_s7, [#allocation5]  }
 0x2d6   :  { %592 = dma.done.wait [#allocation5], 16  }
 0x2d7   :  { %593 = vsyncadd [#allocation5], 4294967280 }
 0x2d8   :  { %423 = vsyncpa [#allocation4], 1 }
 0x2d9   :  { %424 = vsyncpa [#allocation7], 1 }
 0x2da   :  { %425 = vsyncpa [#allocation5], 1 }

</bundles_post_ra>
